<compile_context>
chip_gen: v7x
topology: tpu7x:2x2x1
jax: 0.10.0
libtpu: 0.0.40
codegen_flags: <defaults>
</compile_context>

<pallas_src>
import jax
import jax.numpy as jnp
from jax.experimental import pallas as pl
from jax.experimental.pallas import tpu as pltpu

_LANE = 128


def _stdrop_kernel(data_ref, mask_ref, out_ref):
    # data_ref: (1, tr, L)   mask_ref: (1, 1, L) -> broadcasts over the row axis.
    # Single fused negate-multiply; the kernel is purely HBM-bandwidth bound.
    out_ref[...] = (data_ref[...] * (-mask_ref[...])).astype(out_ref.dtype)


def _sublane_multiple(dtype):
    # Sub-32-bit dtypes pack along sublanes: 8 rows (f32), 16 (bf16), 32 (int8/fp8).
    return max(8, 32 // jnp.dtype(dtype).itemsize)


def _pick_row_tile(n, r, l, dtype, *, target_bytes=8 << 20, min_total_blocks=4):
    """Row (sublane-axis) block size for a (N, R, L) element-wise stream.

    - ~target_bytes per data block (amortizes the ~0.35 us fixed per-step cost)
    - dtype-aware sublane alignment
    - prefers a tile that divides R (no masked edge block from the cdiv grid)
    - for large problems, guarantees >= min_total_blocks grid steps so both
      v7x TensorCores get work (v5e/v6e are single-TC; harmless there).
    """
    itemsize = jnp.dtype(dtype).itemsize
    sub = _sublane_multiple(dtype)
    bytes_per_row = max(1, l * itemsize)
    total_bytes = n * r * bytes_per_row

    rows = max(1, target_bytes // bytes_per_row)
    if rows >= r:
        tr = r                                    # whole axis: block == full dim is legal
    else:
        tr = 0
        d = (rows // sub) * sub
        while d >= sub:                           # largest sublane-aligned divisor of R
            if r % d == 0:
                tr = d
                break
            d -= sub
        if tr == 0:                               # fall back: aligned tile + masked edge
            tr = min(r, max(sub, (rows // sub) * sub))

    if total_bytes >= (4 << 20):                  # skip for tiny problems
        while n * pl.cdiv(r, tr) < min_total_blocks and tr > sub:
            new_tr = max(sub, -(-(tr // 2) // sub) * sub)
            if new_tr >= tr:
                break
            tr = new_tr
    return tr


def _negmul_3d(data3, mask3, *, donate_data=False):
    """out[n, r, l] = -data3[n, r, l] * mask3[n, 0, l], via one pallas_call."""
    n, r, l = data3.shape
    itemsize = jnp.dtype(data3.dtype).itemsize
    tr = _pick_row_tile(n, r, l, data3.dtype)
    block_bytes = tr * l * itemsize
    grid = (n, pl.cdiv(r, tr))

    # Double-buffered data-in + data-out ~= 4x block (+ mask + headroom).
    # 32 MiB floor raises v5e's 16 MiB scoped default; 56 MiB cap stays inside
    # v7x's 64 MiB physical VMEM per TensorCore.
    vmem_limit = int(min(56 << 20, max(32 << 20, 4 * block_bytes + (8 << 20))))

    cost = pl.CostEstimate(
        flops=2 * n * r * l,                        # mul + neg per element
        transcendentals=0,
        bytes_accessed=(2 * n * r * l + n * l) * itemsize,
    )

    return pl.pallas_call(
        _stdrop_kernel,
        out_shape=jax.ShapeDtypeStruct((n, r, l), data3.dtype),
        grid_spec=pltpu.PrefetchScalarGridSpec(
            num_scalar_prefetch=0,
            grid=grid,
            in_specs=[
                pl.BlockSpec((1, tr, l), lambda ni, ci: (ni, ci, 0)),
                # Same tiny mask block for every row block of a batch; Pallas
                # dedups the repeated fetch, so mask HBM traffic stays ~N*L.
                pl.BlockSpec((1, 1, l), lambda ni, ci: (ni, 0, 0)),
            ],
            out_specs=pl.BlockSpec((1, tr, l), lambda ni, ci: (ni, ci, 0)),
        ),
        compiler_params=pltpu.CompilerParams(
            dimension_semantics=("parallel", "parallel"),
            vmem_limit_bytes=vmem_limit,
        ),
        cost_estimate=cost,
        input_output_aliases={0: 0} if donate_data else {},
    )(data3, mask3)


def stdrop_forward(data, score, *, donate_data=False):
    """Pallas implementation of the STDrop hot path: (data * score * -1, score).

    data:        (N, C, H, W)
    score:       broadcastable to (N, 1, H, W); the module produces (N, 1, 1, W).
    donate_data: alias `data` to the output buffer (only safe if the caller
                 never reads the pre-drop activations again).
    """
    n, c, h, w = data.shape
    hw = h * w

    score = jnp.asarray(score)
    score4 = score.reshape((1,) * (4 - score.ndim) + score.shape)
    assert score4.shape[1] == 1, "score must broadcast over channels"
    mask_dtype = data.dtype

    if hw % _LANE == 0:
        # Lane-dense flatten: lane axis = H*W, sublane axis = C.
        data3 = data.reshape(n, c, hw)
        mask3 = jnp.broadcast_to(score4, (n, 1, h, w)).reshape(n, 1, hw)
        out3 = _negmul_3d(data3, mask3.astype(mask_dtype), donate_data=donate_data)
        return out3.reshape(n, c, h, w), score

    if w % _LANE == 0 and score4.shape[2] == 1:
        # W is already lane-dense: fold H into the sublane axis; the mask stays
        # (N, 1, W) with no H-broadcast materialized in HBM (1/(C*H) of data traffic).
        data3 = data.reshape(n, c * h, w)
        mask3 = jnp.broadcast_to(score4, (n, 1, 1, w)).reshape(n, 1, w)
        out3 = _negmul_3d(data3, mask3.astype(mask_dtype), donate_data=donate_data)
        return out3.reshape(n, c, h, w), score

    # Awkward spatial size (neither H*W nor W is a multiple of 128): pad the
    # lane axis up to 128 so every vector store in the kernel is unmasked.
    pad = (-hw) % _LANE
    data3 = jnp.pad(data.reshape(n, c, hw), ((0, 0), (0, 0), (0, pad)))
    mask3 = jnp.pad(
        jnp.broadcast_to(score4, (n, 1, h, w)).reshape(n, 1, hw),
        ((0, 0), (0, 0), (0, pad)),
    )
    out3 = _negmul_3d(data3, mask3.astype(mask_dtype), donate_data=donate_data)
    return out3[:, :, :hw].reshape(n, c, h, w), score


if __name__ == "__main__":
    key = jax.random.PRNGKey(0)
    k1, k2 = jax.random.split(key)

    # NCHW data, small shapes: batch=2, channels=4, spatial 16x16.
    N, C, H, W = 2, 4, 16, 16
    data = jax.random.normal(k1, (N, C, H, W), dtype=jnp.float32)

    # Score as produced by the stdrop branch: values in {-1, 0}, shaped
    # (N, 1, 1, W), broadcasting over channels and rows.
    keep = jax.random.uniform(k2, (N, 1, 1, W)) < 0.5
    score = jnp.where(keep, -1.0, 0.0).astype(jnp.float32)

    out_data, out_score = stdrop_forward(data, score)
    jax.block_until_ready(out_data)
    jax.block_until_ready(out_score)

    ref_data = data * score * -1.0
    assert jnp.allclose(out_data, ref_data, atol=1e-6), "data mismatch"
    assert jnp.array_equal(out_score, score), "score passthrough mismatch"

    # Also exercise the lane-padding path once (awkward 14x14 spatial size).
    H2, W2 = 14, 14
    data2 = jax.random.normal(k1, (N, C, H2, W2), dtype=jnp.float32)
    keep2 = jax.random.uniform(k2, (N, 1, 1, W2)) < 0.5
    score2 = jnp.where(keep2, -1.0, 0.0).astype(jnp.float32)
    out2, _ = stdrop_forward(data2, score2)
    jax.block_until_ready(out2)
    assert jnp.allclose(out2, data2 * score2 * -1.0, atol=1e-6), "padded path mismatch"

    print("KERNEL_OK")
</pallas_src>

<mosaic_0001>
module attributes {stable_mosaic.version = 11 : i64} {
  func.func @_stdrop_kernel(%arg0: i32, %arg1: i32, %arg2: memref<1x4x256xf32, #tpu.memory_space<vmem>>, %arg3: memref<1x1x256xf32, #tpu.memory_space<vmem>>, %arg4: memref<1x4x256xf32, #tpu.memory_space<vmem>>) attributes {dimension_semantics = [#tpu.dimension_semantics<parallel>, #tpu.dimension_semantics<parallel>], iteration_bounds = array<i64: 2, 1>, scalar_prefetch = 0 : i64, scratch_operands = 0 : i64, tpu.core_type = #tpu.core_type<tc>, window_params = [{transform_indices = @transform_0, window_bounds = array<i64: 1, 4, 256>}, {transform_indices = @transform_1, window_bounds = array<i64: 1, 1, 256>}, {transform_indices = @transform_2, window_bounds = array<i64: 1, 4, 256>}]} {
    %c0 = arith.constant 0 : index
    %c0_0 = arith.constant 0 : index
    %c0_1 = arith.constant 0 : index
    %0 = vector.load %arg2[%c0, %c0_0, %c0_1] : memref<1x4x256xf32, #tpu.memory_space<vmem>>, vector<1x4x256xf32>
    %c0_2 = arith.constant 0 : index
    %c0_3 = arith.constant 0 : index
    %c0_4 = arith.constant 0 : index
    %1 = vector.load %arg3[%c0_2, %c0_3, %c0_4] : memref<1x1x256xf32, #tpu.memory_space<vmem>>, vector<1x1x256xf32>
    %cst = arith.constant 0.000000e+00 : f32
    %2 = vector.broadcast %cst : f32 to vector<1x1x256xf32>
    %3 = arith.subf %2, %1 : vector<1x1x256xf32>
    %4 = vector.broadcast %3 : vector<1x1x256xf32> to vector<1x4x256xf32>
    %5 = arith.mulf %0, %4 : vector<1x4x256xf32>
    %c0_5 = arith.constant 0 : index
    %c0_6 = arith.constant 0 : index
    %c0_7 = arith.constant 0 : index
    %6 = vector.load %arg4[%c0_5, %c0_6, %c0_7] : memref<1x4x256xf32, #tpu.memory_space<vmem>>, vector<1x4x256xf32>
    tpu.vector_store %arg4[%c0_5, %c0_6, %c0_7], %5 {strides = array<i32>} : memref<1x4x256xf32, #tpu.memory_space<vmem>>, vector<1x4x256xf32>,
    return
  }
  func.func @transform_0(%arg0: i32, %arg1: i32) -> (i32, i32, i32) {
    %c0_i32 = arith.constant 0 : i32
    %c0_i32_0 = arith.constant 0 : i32
    return %arg0, %arg1, %c0_i32 : i32, i32, i32
  }
  func.func @transform_1(%arg0: i32, %arg1: i32) -> (i32, i32, i32) {
    %c0_i32 = arith.constant 0 : i32
    %c0_i32_0 = arith.constant 0 : i32
    %c0_i32_1 = arith.constant 0 : i32
    return %arg0, %c0_i32, %c0_i32_0 : i32, i32, i32
  }
  func.func @transform_2(%arg0: i32, %arg1: i32) -> (i32, i32, i32) {
    %c0_i32 = arith.constant 0 : i32
    %c0_i32_0 = arith.constant 0 : i32
    return %arg0, %arg1, %c0_i32 : i32, i32, i32
  }
}

</mosaic_0001>

<bundles_post_ra>
// kernel: tpu_custom_call.1
= control target key start
LH: loop header
LB: loop body
LE: loop exit
PB: predicated region body
PF: predicated region fallthrough
CT: control target
= control target key end

     0   :  { %7 = vsyncpa [#allocation3], 0  ;;  %s826_s0 = inlined_call_operand.hbm [shape: f32[2,4,256], index: 0, kind: input, shape index: {}]   ;;  %s827_s1 = inlined_call_operand.hbm [shape: f32[2,1,256], index: 1, kind: input, shape index: {}]   ;;  %s828_s2 = inlined_call_operand.hbm [shape: f32[2,4,256], index: 2, kind: output, shape index: {}]  }
   0x1   :  { %9 = vsyncpa [#allocation3 + $0x1], 0 }
   0x2   :  { %10 = vsyncpa [#allocation6], 0 }
   0x3   :  { %12 = vsyncpa [#allocation6 + $0x1], 0 }
   0x4   :  { %13 = vsyncpa [#allocation4], 0 }
   0x5   :  { %15 = vsyncpa [#allocation4 + $0x1], 0  ;;  %s611_s9 = smov 0   ;;  %s613_s10 = smov 0  }
   0x6   :  { %s615_s11 = smov 0   ;;  %s617_s12 = smov 0  }
   0x7   :  { %s619_s13 = smov 0   ;;  %s621_s14 = smov 0  }
   0x8 LB: > { %s356_s15 = sadd.s32 4294967295, %s591_s14   ;;  %s357_s16 = sadd.s32 4294967294, %s591_s14   ;;  %s591_s14 = sphi %s621_s14, %s21_s14   ;;  %s587_s13 = sphi %s619_s13, %s848_s13   ;;  %s583_s12 = sphi %s617_s12, %s847_s12   ;;  %s579_s11 = sphi %s615_s11, %s846_s11   ;;  %s575_s10 = sphi %s613_s10, %s845_s10   ;;  %s571_s9 = sphi %s611_s9, %s844_s9  }
   0x9   : > { %s33_s17 = sadd.s32 1, %s587_s13  ;;  %s42_s18 = sadd.s32 1, %s579_s11 }
   0xa   : > { %p35_p0 = scmp.ge.s32.totalorder %s33_s17, 2  ;;  %p49_p1 = scmp.ne.s32.totalorder %s579_s11, %s575_s10 }
   0xb   : > { %p50_p2 = scmp.eq.s32.totalorder %s591_s14, 0  ;;  %p55_p3 = scmp.ne.s32.totalorder %s575_s10, %s571_s9 }
   0xc   : > { %s850_s17 = smov (%p35_p0, %s33_s17), 0  ;;  %p56_p5 = scmp.eq.s32.totalorder %s356_s15, 0 }
   0xd   : > { %p652_p4 = por %p50_p2, %p49_p1  ;;  %s37_s20 = ssub.s32 %s587_s13, %s850_s17 }
   0xe   : > { %p107_p6 = scmp.eq.s32.totalorder %s356_s15, 1  ;;  %p40_p7 = scmp.eq.s32.totalorder %s37_s20, 0 }
   0xf   : > { %p658_p8 = por %p56_p5, %p55_p3  ;;  %p113_p10 = scmp.eq.s32.totalorder %s357_s16, 1 }
  0x10   : > { %p662_p9 = por %p107_p6, %p49_p1  ;;  %p395_p13 = scmp.lt.s32.totalorder %s591_s14, 2 }
  0x11   : > { %s832_s21 = scalar_select %p658_p8, 1, 0 }
  0x12   : > { %s833_s22 = scalar_select %p662_p9, 1, 0 }
  0x13   : > { %s667_s23 = scalar_select %p40_p7, %s579_s11, %s42_s18  }
  0x14   : > { %p669_p11 = por %p113_p10, %p55_p3  ;;  %s676_s25 = sand.u32 1, %s579_s11  }
  0x15   : > { %s360_s26 = sshll.u32 %s676_s25, 3  ;;  %s375_s27 = sshll.u32 %s587_s13, 7 }
  0x16   : > { %s834_s24 = scalar_select %p669_p11, 1, 0 }
  0x17   : > { %s683_s30 = scalar_lea.hbm %s826_s0, %s375_s27  ;;  %s137_s3 = scalar_lea.vmem [#allocation2], %s360_s26 }
  0x18   : > { %s147_s4 = sshll.u32 %s137_s3, 4  ;;  %p689_p0 = pnand %p395_p13, %p652_p4  ;;  %s685_s4 = int_to_ptr.vmem [resolvable:$true] %s147_s4 }
  0x19   : > { %s134_s6 = scalar_lea.sflag [#allocation3], %s676_s25  ;;  %s445_s7 = scalar_lea.hbm %s683_s30, 128 }
  0x1a   : > { %p446_p3 = scmp.ne.s32.totalorder %s683_s30, %s445_s7  ;;  %p447_p5 = pneg %p689_p0 }
  0x1b   : > { %s450_s16 = scalar_lea.hbm %s826_s0, 256  ;;  %p451_p4 = scmp.lt.u32.totalorder %s683_s30, %s826_s0 }
  0x1c   : > { %p448_p6 = pnand %p447_p5, %p446_p3  ;;  %p452_p10 = scmp.lt.u32.totalorder %s450_s16, %s445_s7 }
  0x1d   : > { %p454_p12 = scmp.lt.u32.totalorder %s445_s7, %s683_s30 }
  0x1e   : > { %p449_p7 = pneg %p448_p6  ;;  %p453_p13 = por %p452_p10, %p451_p4 }
  0x20   : > { %p455_p1 = por %p454_p12, %p453_p13 }
  0x22   : > { %p456_p2 = pnand %p455_p1, %p449_p7 }
  0x24   : > { %459 = shalt.err (!%p456_p2)
}
  0x25   : > { %s460_s20 = scalar_lea.vmem %s685_s4, 128  ;;  %s593_s26 = smov [#allocation2]  }
  0x26   : > { %p461_p3 = scmp.ne.s32.totalorder %s685_s4, %s460_s20  ;;  %s465_s27 = sshll.u32 %s593_s26, 4  ;;  %s466_s27 = int_to_ptr.vmem [resolvable:$false] %s465_s27 }
  0x27   : > { %s467_s28 = scalar_lea.vmem %s466_s27, 256  ;;  %p468_p9 = scmp.lt.s32.totalorder %s685_s4, %s466_s27 }
  0x28   : > { %p463_p6 = pnand %p461_p3, %p447_p5  ;;  %p469_p4 = scmp.lt.s32.totalorder %s467_s28, %s460_s20 }
  0x2a   : > { %p464_p11 = pneg %p463_p6  ;;  %p470_p10 = por %p469_p4, %p468_p9 }
  0x2c   : > { %p471_p12 = pnand %p470_p10, %p464_p11 }
  0x2e   : > { %474 = shalt.err (!%p471_p12)
}
  0x2f   : > { %387 = dma.hbm_to_vmem [thread:$0]  (!%p689_p0), %s683_s30, 128, %s685_s4, %s134_s6  }
  0x30   : > { %p836_p1 = scmp.lt.s32.totalorder %s591_s14, 3  ;;  %p837_p2 = scmp.ge.s32.totalorder %s591_s14, 1 }
  0x31   : > { %s363_s3 = sshll.u32 %s676_s25, 1  ;;  %s376_s7 = sshll.u32 %s587_s13, 5 }
  0x32   : > { %p725_p7 = pnand %p837_p2, %p836_p1  ;;  %s734_s16 = scalar_lea.hbm %s827_s1, %s376_s7 }
  0x33   : > { %s158_s18 = scalar_lea.vmem [#allocation5], %s363_s3  ;;  %s155_s30 = scalar_lea.sflag [#allocation6], %s676_s25 }
  0x34   : > { %s838_s29 = scalar_select %p725_p7, 1, 0 }
  0x35   : > { %s166_s19 = sshll.u32 %s158_s18, 4  ;;  %s475_s4 = scalar_lea.hbm %s734_s16, 32  ;;  %s167_s19 = int_to_ptr.vmem [resolvable:$true] %s166_s19 }
  0x36   : > { %p476_p9 = scmp.ne.s32.totalorder %s734_s16, %s475_s4  ;;  %s480_s26 = scalar_lea.hbm %s827_s1, 64 }
  0x37   : > { %p481_p3 = scmp.lt.u32.totalorder %s734_s16, %s827_s1  ;;  %p482_p6 = scmp.lt.u32.totalorder %s480_s26, %s475_s4 }
  0x38   : > { %p478_p11 = pnand %p476_p9, %p447_p5  ;;  %p484_p10 = scmp.lt.u32.totalorder %s475_s4, %s734_s16 }
  0x39   : > { %p483_p4 = por %p482_p6, %p481_p3 }
  0x3a   : > { %p479_p13 = pneg %p478_p11 }
  0x3b   : > { %p485_p12 = por %p484_p10, %p483_p4 }
  0x3d   : > { %p486_p1 = pnand %p485_p12, %p479_p13 }
  0x3f   : > { %489 = shalt.err (!%p486_p1)
}
  0x40   : > { %s490_s25 = scalar_lea.vmem %s167_s19, 32  ;;  %s594_s3 = smov [#allocation5]  }
  0x41   : > { %p491_p2 = scmp.ne.s32.totalorder %s167_s19, %s490_s25  ;;  %s495_s7 = sshll.u32 %s594_s3, 4  ;;  %s496_s7 = int_to_ptr.vmem [resolvable:$false] %s495_s7 }
  0x42   : > { %s497_s8 = scalar_lea.vmem %s496_s7, 64  ;;  %p498_p8 = scmp.lt.s32.totalorder %s167_s19, %s496_s7 }
  0x43   : > { %p493_p9 = pnand %p491_p2, %p447_p5  ;;  %p499_p7 = scmp.lt.s32.totalorder %s497_s8, %s490_s25 }
  0x45   : > { %p494_p11 = pneg %p493_p9  ;;  %p500_p3 = por %p499_p7, %p498_p8 }
  0x47   : > { %p501_p6 = pnand %p500_p3, %p494_p11 }
  0x49   : > { %504 = shalt.err (!%p501_p6)
}
  0x4a   : > { %390 = dma.hbm_to_vmem [thread:$0]  (!%p689_p0), %s734_s16, 32, %s167_s19, %s155_s30  }
  0x4b   : > { %p839_p13 = scmp.ne.s32.totalorder %s838_s29, 0 }
  0x4c   : > { %s759_s15 = sand.u32 (!%p839_p13), 1, %s575_s10   ;;  %p840_p5 = scmp.ne.s32.totalorder (!%p839_p13), %s832_s21, 0 }
  0x4d   : > { %175 = sbr.rel (%p839_p13) target bundleno = 114 (0x72), region = 28  ;;  %s367_s18 = sshll.u32 (!%p839_p13), %s759_s15, 3 }
  0x4e   : > { %s178_s4 = scalar_lea.sflag (!%p839_p13), [#allocation3], %s759_s15  ;;  %s181_s6 = scalar_lea.vmem (!%p839_p13), [#allocation2], %s367_s18 }
  0x54   : > { %558 = dma.done.wait (%p840_p5), %s178_s4, 128  }
  0x55   : > { %560 = vsyncadd (%p840_p5), %s178_s4, 4294967168  ;;  %s368_s5 = sshll.u32 %s759_s15, 1  ;;  %s187_s29 = scalar_lea.sflag [#allocation6], %s759_s15 }
  0x56   : > { %s190_s16 = scalar_lea.vmem [#allocation5], %s368_s5 }
  0x57   : > { %562 = dma.done.wait (%p840_p5), %s187_s29, 32  }
  0x58   : > { %564 = vsyncadd (%p840_p5), %s187_s29, 4294967264  ;;  %v220_v0 = vlaneseq  ;;  %v217_v4 = vld [vmem:[%s190_s16] sm:$0x3]  ;;  %v216_v8 = vld [vmem:[%s181_s6] sm:$0xff]  ;;  %s215_s19 = scalar_lea.vmem [#allocation7], %s367_s18  ;;  %s377_s20 = sshll.u32 %s583_s12, 7 }
  0x59   : > { %v218_v5 = vsub.f32 0.0, %v217_v4  ;;  %s249_s30 = sshll.u32 %s215_s19, 4  ;;  %s779_s27 = scalar_lea.hbm %s828_s2, %s377_s20  ;;  %s774_s30 = int_to_ptr.vmem [resolvable:$true] %s249_s30 }
  0x5a   : > { %v221_v1 = vshrl.u32 %v220_v0, 7  ;;  %s233_s28 = scalar_lea.sflag [#allocation4], %s759_s15  ;;  %s505_s25 = scalar_lea.vmem %s774_s30, 128 }
  0x5b   : > { %p506_p8 = scmp.ne.s32.totalorder %s774_s30, %s505_s25  ;;  %p841_p0 = scmp.ne.s32.totalorder %s833_s22, 0 }
  0x5c   : > { %v222_v2 = vsub.s32 0, %v221_v1  ;;  %v226_v3 = vsub.s32 1, %v221_v1  ;;  %s595_s12 = smov [#allocation7]  }
  0x5d   : > { %p507_p7 = pnand %p506_p8, %p841_p0  ;;  %s509_s3 = sshll.u32 %s595_s12, 4  ;;  %s510_s3 = int_to_ptr.vmem [resolvable:$false] %s509_s3 }
  0x5e   : > { %v223_v6 = vrot.slane %v218_v5, %v222_v2  ;;  %v227_v7 = vrot.slane %v218_v5, %v226_v3  ;;  %s511_s7 = scalar_lea.vmem %s510_s3, 256  ;;  %p512_p10 = scmp.lt.s32.totalorder %s774_s30, %s510_s3 }
  0x5f   : > { %p508_p4 = pneg %p507_p7  ;;  %p513_p12 = scmp.lt.s32.totalorder %s511_s7, %s505_s25 }
  0x60   : > { %v228_v9 = vcombine.low %v223_v6, %v227_v7 }
  0x61   : > { %p514_p1 = por %p513_p12, %p512_p10 }
  0x62   : > { %v230_v10 = vmul.f32 %v228_v9, %v216_v8 }
  0x63   : > { %p515_p2 = pnand %p514_p1, %p508_p4 }
  0x64   : > { %231 = vst [vmem:[%s215_s19] sm:$0xff] %v230_v10 }
  0x65   : > { %518 = shalt.err (!%p515_p2)
}
  0x66   : > { %s519_s8 = scalar_lea.hbm %s779_s27, 128  ;;  %s523_s4 = scalar_lea.hbm %s828_s2, 256 }
  0x67   : > { %p520_p9 = scmp.ne.s32.totalorder %s779_s27, %s519_s8  ;;  %p524_p6 = scmp.lt.u32.totalorder %s779_s27, %s828_s2 }
  0x68   : > { %p525_p13 = scmp.lt.u32.totalorder %s523_s4, %s519_s8  ;;  %p527_p8 = scmp.lt.u32.totalorder %s519_s8, %s779_s27 }
  0x69   : > { %p521_p11 = pnand %p520_p9, %p841_p0 }
  0x6a   : > { %p526_p5 = por %p525_p13, %p524_p6 }
  0x6b   : > { %p522_p3 = pneg %p521_p11 }
  0x6c   : > { %p528_p7 = por %p527_p8, %p526_p5 }
  0x6e   : > { %p529_p4 = pnand %p528_p7, %p522_p3 }
  0x70   : > { %532 = shalt.err (!%p529_p4)
}
  0x71   : > { %382 = dma.vmem_to_hbm [thread:$0]  (%p841_p0), %s774_s30, 128, %s779_s27, %s233_s28  }
  0x72 PF: > { %s261_s29 = sand.u32 1, %s571_s9   ;;  %p842_p10 = scmp.ne.s32.totalorder %s834_s24, 0 }
  0x73   : > { %p843_p12 = scmp.ge.s32.totalorder %s591_s14, 2  ;;  %s262_s16 = scalar_lea.sflag [#allocation4], %s261_s29 }
  0x75   : > { %p392_p1 = pnand %p843_p12, %p842_p10 }
  0x77   : > { %566 = dma.done.wait (!%p392_p1), %s262_s16, 128  }
  0x78   : > { %568 = vsyncadd (!%p392_p1), %s262_s16, 4294967168  ;;  %s21_s14 = sadd.s32 1, %s591_s14   ;;  %s844_s9 = smov %s575_s10 }
  0x79   : > { %p18_p2 = scmp.ge.s32.totalorder %s21_s14, 4   ;;  %s845_s10 = smov %s579_s11 }
  0x7a   : > { %s846_s11 = smov %s667_s23  ;;  %s847_s12 = smov %s587_s13 }
  0x7b   : > { %s848_s13 = smov %s850_s17  ;;  %20 = sbr.rel (!%p18_p2) target bundleno = 8 (0x8), region = 86 }
  0x82   :  { %267 = vsyncpa [#allocation3], 1 }
  0x83   :  { %269 = vsyncpa [#allocation3 + $0x1], 1 }
  0x84   :  { %270 = vsyncpa [#allocation6], 1 }
  0x85   :  { %272 = vsyncpa [#allocation6 + $0x1], 1 }
  0x86   :  { %273 = vsyncpa [#allocation4], 1 }
  0x87   :  { %275 = vsyncpa [#allocation4 + $0x1], 1 }

</bundles_post_ra>
